<compile_context>
chip_gen: v6e
topology: v6e:2x2x1
jax: 0.10.0
libtpu: 0.0.40
codegen_flags: <defaults>
</compile_context>

<pallas_src>
import functools

import jax
import jax.numpy as jnp
from jax.experimental import pallas as pl
from jax.experimental.pallas import tpu as pltpu

_DIMS = (5, 24, 20, 20, 14, 10)     # layer widths of the torch module
_NLAYERS = len(_DIMS) - 1           # 5 linear layers
_PAD = max(_DIMS)                   # 24: every layer is zero-padded to (24, 24)
_LANE = 128


def _round_up(n, m):
    return ((n + m - 1) // m) * m


def _leaky_relu(x, slope=0.01):
    return jnp.where(x > 0, x, slope * x)


def mlp_kernel(x_ref, wp_ref, bp_ref, o_ref):
    """x_ref: (in_f, Bt)  wp_ref: (5, 24, 24)  bp_ref: (5, 24, 1)  o_ref: (out_f, Bt)."""
    in_f = x_ref.shape[0]
    out_f = o_ref.shape[0]

    x = x_ref[...]                                                  # (5, Bt), lane-dense load

    # Layer 1 (relu): real weight is (24, in_f) -> static slice of the padded block.
    h = jnp.dot(wp_ref[0][:, :in_f], x,
                preferred_element_type=jnp.float32) + bp_ref[0]
    h = jnp.maximum(h, 0.0)

    # Layer 2 (relu): padded (24, 24) weights; zero rows/cols are harmless.
    h = jnp.dot(wp_ref[1], h, preferred_element_type=jnp.float32) + bp_ref[1]
    h = jnp.maximum(h, 0.0)

    # Layer 3 (leaky_relu, slope 0.01)
    h = jnp.dot(wp_ref[2], h, preferred_element_type=jnp.float32) + bp_ref[2]
    h = _leaky_relu(h)

    # Layer 4 (leaky_relu, slope 0.01)
    h = jnp.dot(wp_ref[3], h, preferred_element_type=jnp.float32) + bp_ref[3]
    h = _leaky_relu(h)

    # Layer 5 (no activation)
    h = jnp.dot(wp_ref[4], h, preferred_element_type=jnp.float32) + bp_ref[4]

    o_ref[...] = h[:out_f, :].astype(o_ref.dtype)                   # (10, Bt), lane-dense store


def pack_params(params):
    """params: list of (W, b), torch layout W=(out, in), b=(out,). Returns padded blocks."""
    wp = jnp.zeros((_NLAYERS, _PAD, _PAD), jnp.float32)
    bp = jnp.zeros((_NLAYERS, _PAD, 1), jnp.float32)
    for l, (w, b) in enumerate(params):
        o, i = w.shape
        wp = wp.at[l, :o, :i].set(w.astype(jnp.float32))
        bp = bp.at[l, :o, 0].set(b.reshape(-1).astype(jnp.float32))
    return wp, bp


@functools.partial(jax.jit, static_argnames=("max_batch_tile",))
def mlp_forward(x, wp, bp, *, max_batch_tile=2048):
    """x: (B, in_features) f32 -> (B, out_features) f32 (same semantics as the torch module)."""
    B, in_f = x.shape
    out_f = _DIMS[-1]

    # Batch on lanes: pad B up to a multiple of the (128-aligned) batch tile.
    b_tile = min(max_batch_tile, _round_up(B, _LANE))
    b_pad = _round_up(B, b_tile)
    xt = jnp.zeros((in_f, b_pad), jnp.float32).at[:, :B].set(x.T)

    flops_per_row = 2 * sum(a * b for a, b in zip(_DIMS[:-1], _DIMS[1:]))   # 2840
    cost = pl.CostEstimate(
        flops=b_pad * flops_per_row,
        transcendentals=0,
        bytes_accessed=b_pad * (in_f + out_f) * 4 + (wp.size + bp.size) * 4,
    )

    out_t = pl.pallas_call(
        mlp_kernel,
        out_shape=jax.ShapeDtypeStruct((out_f, b_pad), jnp.float32),
        grid_spec=pltpu.PrefetchScalarGridSpec(
            num_scalar_prefetch=0,
            grid=(b_pad // b_tile,),
            in_specs=[
                pl.BlockSpec((in_f, b_tile), lambda i: (0, i)),             # x tile (lane-dense)
                pl.BlockSpec((_NLAYERS, _PAD, _PAD), lambda i: (0, 0, 0)),  # packed weights (resident)
                pl.BlockSpec((_NLAYERS, _PAD, 1), lambda i: (0, 0, 0)),     # packed biases  (resident)
            ],
            out_specs=pl.BlockSpec((out_f, b_tile), lambda i: (0, i)),      # out tile (lane-dense)
        ),
        compiler_params=pltpu.CompilerParams(
            dimension_semantics=("parallel",)),
        cost_estimate=cost,
    )(xt, wp, bp)

    return out_t[:, :B].T


def init_params(key, in_features=5, out_features=10):
    """kaiming_uniform_ (a=0, fan_in) weights in torch (out, in) layout + zero biases."""
    dims = (in_features, 24, 20, 20, 14, out_features)
    params = []
    for fan_in, fan_out in zip(dims[:-1], dims[1:]):
        key, sub = jax.random.split(key)
        bound = jnp.sqrt(2.0) * jnp.sqrt(3.0 / fan_in)
        w = jax.random.uniform(sub, (fan_out, fan_in), jnp.float32, -bound, bound)
        b = jnp.zeros((fan_out,), jnp.float32)
        params.append((w, b))
    return params


def mlp_reference(x, params):
    acts = [jax.nn.relu, jax.nn.relu,
            functools.partial(jax.nn.leaky_relu, negative_slope=0.01),
            functools.partial(jax.nn.leaky_relu, negative_slope=0.01),
            lambda v: v]
    h = x
    for (w, b), act in zip(params, acts):
        h = act(h @ w.T + b)
    return h


if __name__ == "__main__":
    key = jax.random.PRNGKey(0)
    pkey, xkey = jax.random.split(key)

    in_features, out_features = 5, 10
    params = init_params(pkey, in_features, out_features)
    wp, bp = pack_params(params)

    # Small shape consistent with the module: (batch=8, in_features=5).
    batch = 8
    x = jax.random.normal(xkey, (batch, in_features), jnp.float32)
    out = jax.block_until_ready(mlp_forward(x, wp, bp))
    ref = mlp_reference(x, params)
    assert out.shape == (batch, out_features)
    assert jnp.allclose(out, ref, atol=1e-4, rtol=1e-4), "mismatch vs reference (batch=8)"

    # Quickly exercise the padding + multi-step grid path (grid of 2 steps).
    x2 = jax.random.normal(jax.random.PRNGKey(1), (384, in_features), jnp.float32)
    out2 = jax.block_until_ready(mlp_forward(x2, wp, bp, max_batch_tile=256))
    ref2 = mlp_reference(x2, params)
    assert out2.shape == (384, out_features)
    assert jnp.allclose(out2, ref2, atol=1e-4, rtol=1e-4), "mismatch vs reference (batch=384)"

    print("KERNEL_OK")
</pallas_src>

<mosaic_0001>
module attributes {stable_mosaic.version = 11 : i64} {
  func.func @mlp_kernel(%arg0: i32, %arg1: memref<5x128xf32, #tpu.memory_space<vmem>>, %arg2: memref<5x24x24xf32, #tpu.memory_space<vmem>>, %arg3: memref<5x24x1xf32, #tpu.memory_space<vmem>>, %arg4: memref<10x128xf32, #tpu.memory_space<vmem>>) attributes {dimension_semantics = [#tpu.dimension_semantics<parallel>], iteration_bounds = array<i64: 1>, scalar_prefetch = 0 : i64, scratch_operands = 0 : i64, tpu.core_type = #tpu.core_type<tc>, window_params = [{transform_indices = @transform_0, window_bounds = array<i64: 5, 128>}, {pipeline_mode = #tpu.pipeline_mode<synchronous>, transform_indices = @transform_1, window_bounds = array<i64: 5, 24, 24>}, {pipeline_mode = #tpu.pipeline_mode<synchronous>, transform_indices = @transform_2, window_bounds = array<i64: 5, 24, 1>}, {transform_indices = @transform_3, window_bounds = array<i64: 10, 128>}]} {
    %c0 = arith.constant 0 : index
    %c0_0 = arith.constant 0 : index
    %0 = vector.load %arg1[%c0, %c0_0] : memref<5x128xf32, #tpu.memory_space<vmem>>, vector<5x128xf32>
    %c0_1 = arith.constant 0 : index
    %c0_2 = arith.constant 0 : index
    %c0_3 = arith.constant 0 : index
    %1 = vector.load %arg2[%c0_1, %c0_2, %c0_3] : memref<5x24x24xf32, #tpu.memory_space<vmem>>, vector<1x24x24xf32>
    %2 = vector.shape_cast %1 : vector<1x24x24xf32> to vector<24x24xf32>
    %3 = vector.extract_strided_slice %2 {offsets = [0, 0], sizes = [24, 5], strides = [1, 1]} : vector<24x24xf32> to vector<24x5xf32>
    %cst = arith.constant dense<0.000000e+00> : vector<24x128xf32>
    %4 = tpu.matmul %3, %0, %cst {dimension_numbers = #tpu.dot_dimension_numbers<[1], [0], [0], [1], [0, 0, 1, 1], [], []>} : vector<24x5xf32>, vector<5x128xf32>, vector<24x128xf32> -> vector<24x128xf32>
    %c0_4 = arith.constant 0 : index
    %c0_5 = arith.constant 0 : index
    %c0_6 = arith.constant 0 : index
    %5 = vector.load %arg3[%c0_4, %c0_5, %c0_6] : memref<5x24x1xf32, #tpu.memory_space<vmem>>, vector<1x24x1xf32>
    %6 = vector.shape_cast %5 : vector<1x24x1xf32> to vector<24x1xf32>
    %7 = vector.broadcast %6 : vector<24x1xf32> to vector<24x128xf32>
    %8 = arith.addf %4, %7 : vector<24x128xf32>
    %cst_7 = arith.constant 0.000000e+00 : f32
    %9 = vector.broadcast %cst_7 : f32 to vector<24x128xf32>
    %10 = arith.maximumf %8, %9 : vector<24x128xf32>
    %c1 = arith.constant 1 : index
    %c0_8 = arith.constant 0 : index
    %c0_9 = arith.constant 0 : index
    %11 = vector.load %arg2[%c1, %c0_8, %c0_9] : memref<5x24x24xf32, #tpu.memory_space<vmem>>, vector<1x24x24xf32>
    %12 = vector.shape_cast %11 : vector<1x24x24xf32> to vector<24x24xf32>
    %cst_10 = arith.constant dense<0.000000e+00> : vector<24x128xf32>
    %13 = tpu.matmul %12, %10, %cst_10 {dimension_numbers = #tpu.dot_dimension_numbers<[1], [0], [0], [1], [0, 0, 1, 1], [], []>} : vector<24x24xf32>, vector<24x128xf32>, vector<24x128xf32> -> vector<24x128xf32>
    %c1_11 = arith.constant 1 : index
    %c0_12 = arith.constant 0 : index
    %c0_13 = arith.constant 0 : index
    %14 = vector.load %arg3[%c1_11, %c0_12, %c0_13] : memref<5x24x1xf32, #tpu.memory_space<vmem>>, vector<1x24x1xf32>
    %15 = vector.shape_cast %14 : vector<1x24x1xf32> to vector<24x1xf32>
    %16 = vector.broadcast %15 : vector<24x1xf32> to vector<24x128xf32>
    %17 = arith.addf %13, %16 : vector<24x128xf32>
    %cst_14 = arith.constant 0.000000e+00 : f32
    %18 = vector.broadcast %cst_14 : f32 to vector<24x128xf32>
    %19 = arith.maximumf %17, %18 : vector<24x128xf32>
    %c2 = arith.constant 2 : index
    %c0_15 = arith.constant 0 : index
    %c0_16 = arith.constant 0 : index
    %20 = vector.load %arg2[%c2, %c0_15, %c0_16] : memref<5x24x24xf32, #tpu.memory_space<vmem>>, vector<1x24x24xf32>
    %21 = vector.shape_cast %20 : vector<1x24x24xf32> to vector<24x24xf32>
    %cst_17 = arith.constant dense<0.000000e+00> : vector<24x128xf32>
    %22 = tpu.matmul %21, %19, %cst_17 {dimension_numbers = #tpu.dot_dimension_numbers<[1], [0], [0], [1], [0, 0, 1, 1], [], []>} : vector<24x24xf32>, vector<24x128xf32>, vector<24x128xf32> -> vector<24x128xf32>
    %c2_18 = arith.constant 2 : index
    %c0_19 = arith.constant 0 : index
    %c0_20 = arith.constant 0 : index
    %23 = vector.load %arg3[%c2_18, %c0_19, %c0_20] : memref<5x24x1xf32, #tpu.memory_space<vmem>>, vector<1x24x1xf32>
    %24 = vector.shape_cast %23 : vector<1x24x1xf32> to vector<24x1xf32>
    %25 = vector.broadcast %24 : vector<24x1xf32> to vector<24x128xf32>
    %26 = arith.addf %22, %25 : vector<24x128xf32>
    %cst_21 = arith.constant 0.000000e+00 : f32
    %27 = vector.broadcast %cst_21 : f32 to vector<24x128xf32>
    %28 = arith.cmpf ogt, %26, %27 : vector<24x128xf32>
    %cst_22 = arith.constant 0.00999999977 : f32
    %29 = vector.broadcast %cst_22 : f32 to vector<24x128xf32>
    %30 = arith.mulf %29, %26 : vector<24x128xf32>
    %31 = arith.select %28, %26, %30 : vector<24x128xi1>, vector<24x128xf32>
    %c3 = arith.constant 3 : index
    %c0_23 = arith.constant 0 : index
    %c0_24 = arith.constant 0 : index
    %32 = vector.load %arg2[%c3, %c0_23, %c0_24] : memref<5x24x24xf32, #tpu.memory_space<vmem>>, vector<1x24x24xf32>
    %33 = vector.shape_cast %32 : vector<1x24x24xf32> to vector<24x24xf32>
    %cst_25 = arith.constant dense<0.000000e+00> : vector<24x128xf32>
    %34 = tpu.matmul %33, %31, %cst_25 {dimension_numbers = #tpu.dot_dimension_numbers<[1], [0], [0], [1], [0, 0, 1, 1], [], []>} : vector<24x24xf32>, vector<24x128xf32>, vector<24x128xf32> -> vector<24x128xf32>
    %c3_26 = arith.constant 3 : index
    %c0_27 = arith.constant 0 : index
    %c0_28 = arith.constant 0 : index
    %35 = vector.load %arg3[%c3_26, %c0_27, %c0_28] : memref<5x24x1xf32, #tpu.memory_space<vmem>>, vector<1x24x1xf32>
    %36 = vector.shape_cast %35 : vector<1x24x1xf32> to vector<24x1xf32>
    %37 = vector.broadcast %36 : vector<24x1xf32> to vector<24x128xf32>
    %38 = arith.addf %34, %37 : vector<24x128xf32>
    %cst_29 = arith.constant 0.000000e+00 : f32
    %39 = vector.broadcast %cst_29 : f32 to vector<24x128xf32>
    %40 = arith.cmpf ogt, %38, %39 : vector<24x128xf32>
    %cst_30 = arith.constant 0.00999999977 : f32
    %41 = vector.broadcast %cst_30 : f32 to vector<24x128xf32>
    %42 = arith.mulf %41, %38 : vector<24x128xf32>
    %43 = arith.select %40, %38, %42 : vector<24x128xi1>, vector<24x128xf32>
    %c4 = arith.constant 4 : index
    %c0_31 = arith.constant 0 : index
    %c0_32 = arith.constant 0 : index
    %44 = vector.load %arg2[%c4, %c0_31, %c0_32] : memref<5x24x24xf32, #tpu.memory_space<vmem>>, vector<1x24x24xf32>
    %45 = vector.shape_cast %44 : vector<1x24x24xf32> to vector<24x24xf32>
    %cst_33 = arith.constant dense<0.000000e+00> : vector<24x128xf32>
    %46 = tpu.matmul %45, %43, %cst_33 {dimension_numbers = #tpu.dot_dimension_numbers<[1], [0], [0], [1], [0, 0, 1, 1], [], []>} : vector<24x24xf32>, vector<24x128xf32>, vector<24x128xf32> -> vector<24x128xf32>
    %c4_34 = arith.constant 4 : index
    %c0_35 = arith.constant 0 : index
    %c0_36 = arith.constant 0 : index
    %47 = vector.load %arg3[%c4_34, %c0_35, %c0_36] : memref<5x24x1xf32, #tpu.memory_space<vmem>>, vector<1x24x1xf32>
    %48 = vector.shape_cast %47 : vector<1x24x1xf32> to vector<24x1xf32>
    %49 = vector.broadcast %48 : vector<24x1xf32> to vector<24x128xf32>
    %50 = arith.addf %46, %49 : vector<24x128xf32>
    %51 = vector.extract_strided_slice %50 {offsets = [0, 0], sizes = [10, 128], strides = [1, 1]} : vector<24x128xf32> to vector<10x128xf32>
    %c0_37 = arith.constant 0 : index
    %c0_38 = arith.constant 0 : index
    %52 = vector.load %arg4[%c0_37, %c0_38] : memref<10x128xf32, #tpu.memory_space<vmem>>, vector<10x128xf32>
    tpu.vector_store %arg4[%c0_37, %c0_38], %51 {strides = array<i32>} : memref<10x128xf32, #tpu.memory_space<vmem>>, vector<10x128xf32>,
    return
  }
  func.func @transform_0(%arg0: i32) -> (i32, i32) {
    %c0_i32 = arith.constant 0 : i32
    %c0_i32_0 = arith.constant 0 : i32
    return %c0_i32, %arg0 : i32, i32
  }
  func.func @transform_1(%arg0: i32) -> (i32, i32, i32) {
    %c0_i32 = arith.constant 0 : i32
    %c0_i32_0 = arith.constant 0 : i32
    %c0_i32_1 = arith.constant 0 : i32
    %c0_i32_2 = arith.constant 0 : i32
    return %c0_i32, %c0_i32_0, %c0_i32_1 : i32, i32, i32
  }
  func.func @transform_2(%arg0: i32) -> (i32, i32, i32) {
    %c0_i32 = arith.constant 0 : i32
    %c0_i32_0 = arith.constant 0 : i32
    %c0_i32_1 = arith.constant 0 : i32
    %c0_i32_2 = arith.constant 0 : i32
    return %c0_i32, %c0_i32_0, %c0_i32_1 : i32, i32, i32
  }
  func.func @transform_3(%arg0: i32) -> (i32, i32) {
    %c0_i32 = arith.constant 0 : i32
    %c0_i32_0 = arith.constant 0 : i32
    return %c0_i32, %arg0 : i32, i32
  }
}

</mosaic_0001>

<bundles_post_ra>
// kernel: mlp_forward.1
= control target key start
LH: loop header
LB: loop body
LE: loop exit
PB: predicated region body
PF: predicated region fallthrough
CT: control target
= control target key end

     0   :  { %vm46_vm0 = vcmask 1044480   ;;  %v753_v0 = vmov 0.0   ;;  %vm36_vm1 = vcmask 39936   ;;  %vm754_vm2 = vmmov 0   ;;  %s931_s0 = inlined_call_operand.vmem [shape: f32[5,128], index: 0, kind: input, shape index: {}]   ;;  %s932_s1 = inlined_call_operand.vmem [shape: f32[5,24,24], index: 1, kind: input, shape index: {}]   ;;  %s933_s2 = inlined_call_operand.vmem [shape: f32[5,24,1], index: 2, kind: input, shape index: {}]   ;;  %s934_s3 = inlined_call_operand.vmem [shape: f32[10,128], index: 3, kind: output, shape index: {}]  }
   0x1   :  { %675 = vmatprep.subr.mxu0 %v753_v0  ;;  %746 = vmatprep.subr.mxu1 %v753_v0  ;;  %v14_v1 = vld [vmem:[%s931_s0] sm:$0x1f]  ;;  %v17_v3 = vld [vmem:[%s932_s1 + $0x10] sm:$0xff]  ;;  %v16_v6 = vld [vmem:[%s932_s1 + $0x8] sm:$0xff]  ;;  %v755_v7 = vmov 0   ;;  %vm156_vm3 = vcmask 195584  }
   0x2   :  { %v15_v2 = vld [vmem:[%s932_s1] sm:$0xff]  ;;  %676 = vmatpush3.msk.msra.mxu0 %vm46_vm0, %v14_v1  ;;  %747 = vmatpush3.msk.msra.mxu1 %vm46_vm0, %v14_v1  ;;  %v20_v4 = vld [vmem:[%s933_s2 + $0x10] sm:$0xff]  ;;  %v19_v8 = vld [vmem:[%s933_s2 + $0x8] sm:$0xff] }
   0x3   :  { %677 = vmatprep.mubr.msk.f32.mxu0 %vm754_vm2, %v753_v0  ;;  %683 = vmatprep.mubr.msk.f32.mxu1 %vm754_vm2, %v753_v0  ;;  %v18_v5 = vld [vmem:[%s933_s2] sm:$0xff]  ;;  %v616_v9 = vld [vmem:[%s933_s2 + $0x28] sm:$0xff]  ;;  %v614_v11 = vld [vmem:[%s933_s2 + $0x18] sm:$0xff] }
   0x4   :  { %678 = vmatmul.mubr.msk.f32.vlgmr.msra.gmra.mxu0 %vm36_vm1, %v15_v2  ;;  %684 = vmatmul.mubr.msk.f32.vlgmr.msra.gmra.mxu1 %vm36_vm1, %v17_v3  ;;  %v615_v10 = vld [vmem:[%s933_s2 + $0x20] sm:$0xff]  ;;  %v624_v13 = vld [vmem:[%s933_s2 + $0x38] sm:$0xff]  ;;  %v623_v14 = vld [vmem:[%s933_s2 + $0x30] sm:$0xff] }
   0x5   :  { %680 = vmatprep.mubr.msk.f32.mxu0 %vm754_vm2, %v753_v0  ;;  %751 = vset.pattern.permute.xlu0 %v755_v7  ;;  %v625_v12 = vld [vmem:[%s933_s2 + $0x40] sm:$0xff]  ;;  %v634_v15 = vld [vmem:[%s933_s2 + $0x58] sm:$0xff]  ;;  %v633_v16 = vld [vmem:[%s933_s2 + $0x50] sm:$0xff] }
   0x6   :  { %33 = vperm.xlu0 %751, %v20_v4   ;;  %752 = vset.pattern.permute.xlu1 %v755_v7  ;;  %v632_v17 = vld [vmem:[%s933_s2 + $0x48] sm:$0xff]  ;;  %v641_v18 = vld [vmem:[%s933_s2 + $0x60] sm:$0xff]  ;;  %v611_v35 = vld [vmem:[%s932_s1 + $0x18] sm:$0xff] }
   0x7   :  { %23 = vperm.xlu1 %752, %v18_v5   ;;  %686 = vmatprep.subr.mxu1 %v753_v0  ;;  %v642_v19 = vld [vmem:[%s933_s2 + $0x68] sm:$0xff]  ;;  %v612_v36 = vld [vmem:[%s932_s1 + $0x20] sm:$0xff]  ;;  %v620_v53 = vld [vmem:[%s932_s1 + $0x30] sm:$0xff] }
   0x8   :  { %681 = vmatmul.mubr.msk.f32.gmra.mxu0 %vm36_vm1, %v16_v6  ;;  %692 = vmatprep.mubr.msk.f32.mxu1 %vm754_vm2, %v753_v0  ;;  %v613_v37 = vld [vmem:[%s932_s1 + $0x28] sm:$0xff]  ;;  %v621_v54 = vld [vmem:[%s932_s1 + $0x38] sm:$0xff]  ;;  %v622_v55 = vld [vmem:[%s932_s1 + $0x40] sm:$0xff] }
   0x9   :  { %701 = vmatprep.subr.mxu0 %v753_v0  ;;  %707 = vmatprep.mubr.msk.f32.mxu0 %vm754_vm2, %v753_v0 }
   0xa   :  { %28 = vperm.xlu0 %751, %v19_v8  }
   0xb   :  { %153 = vperm.xlu1 %752, %v616_v9  }
   0xe   :  { %148 = vperm.xlu0 %751, %v615_v10   ;;  %v629_v10 = vld [vmem:[%s932_s1 + $0x48] sm:$0xff] }
   0xf   :  { %143 = vperm.xlu1 %752, %v614_v11  }
  0x12   :  { %269 = vperm.xlu0 %751, %v625_v12   ;;  %v630_v12 = vld [vmem:[%s932_s1 + $0x50] sm:$0xff] }
  0x13   :  { %264 = vperm.xlu1 %752, %v624_v13   ;;  %v631_v13 = vld [vmem:[%s932_s1 + $0x58] sm:$0xff] }
  0x16   :  { %259 = vperm.xlu0 %751, %v623_v14  }
  0x17   :  { %390 = vperm.xlu1 %752, %v634_v15  }
  0x1a   :  { %385 = vperm.xlu0 %751, %v633_v16  }
  0x1b   :  { %380 = vperm.xlu1 %752, %v632_v17  }
  0x1e   :  { %501 = vperm.xlu0 %751, %v641_v18  }
  0x1f   :  { %506 = vperm.xlu1 %752, %v642_v19  }
  0x81   :  { %v34_v20 = vpop.permute.xlu0 %33 }
  0x82   :  { %v24_v26 = vpop.permute.xlu1 %23 }
  0x85   :  { %v29_v28 = vpop.permute.xlu0 %28 }
  0x86   :  { %v154_v40 = vpop.permute.xlu1 %153 }
  0x89   :  { %v149_v43 = vpop.permute.xlu0 %148 }
  0x8a   :  { %v144_v47 = vpop.permute.xlu1 %143 }
  0x8d   :  { %v270_v57 = vpop.permute.xlu0 %269 }
  0x8e   :  { %v265_v60 = vpop.permute.xlu1 %264 }
  0x91   :  { %v260_v63 = vpop.permute.xlu0 %259 }
  0x92   :  { %v391_v15 = vpop.permute.xlu1 %390 }
  0x95   :  { %v386_v18 = vpop.permute.xlu0 %385 }
  0xc4   :  { %v116_v21 = vpop.f32.mrf.mxu0  ;;  %v126_v22 = vpop.f32.mrf.mxu1 }
  0xc5   :  { %v127_v23 = vadd.f32 %v126_v22, %v34_v20  ;;  %v117_v30 = vadd.f32 %v116_v21, %v24_v26  ;;  %v381_v21 = vpop.permute.xlu1 %380 }
  0xc6   :  { %v679_v24 = vpop.f32.mrf.mxu0  ;;  %v685_v25 = vpop.f32.mrf.mxu1 }
  0xc7   :  { %v132_v27 = vmax.f32 %v127_v23, 0.0  ;;  %v130_v34 = vmax.f32 %v117_v30, 0.0 }
  0xc8   :  { %v121_v29 = vpop.f32.mrf.mxu0 }
  0xc9   :  { %v122_v31 = vadd.f32 %v121_v29, %v29_v28  ;;  %687 = vmatpush3.msra.mxu1 %v132_v27 }
  0xca   :  { %v682_v32 = vpop.f32.mrf.mxu0  ;;  %688 = vmatprep.subr.mxu1 %v753_v0 }
  0xcb   :  { %v131_v33 = vmax.f32 %v122_v31, 0.0  ;;  %v638_v31 = vld [vmem:[%s932_s1 + $0x60] sm:$0xff] }
  0xcd   :  { %689 = vmatpush3.msra.mxu1 %v131_v33  ;;  %v639_v33 = vld [vmem:[%s932_s1 + $0x68] sm:$0xff] }
  0xce   :  { %690 = vmatprep.subr.mxu1 %v753_v0 }
  0xcf   :  { %691 = vmatpush3.msra.mxu1 %v130_v34  ;;  %v640_v34 = vld [vmem:[%s932_s1 + $0x70] sm:$0xff] }
  0xd0   :  { %693 = vmatmul.mubr.msk.f32.vlgmr.msra.gmra.mxu1 %vm156_vm3, %v611_v35  ;;  %716 = vmatprep.subr.mxu1 %v753_v0  ;;  %v502_v35 = vpop.permute.xlu0 %501 }
  0xd1   :  { %695 = vmatprep.mubr.msk.f32.mxu1 %vm754_vm2, %v753_v0 }
  0xd4   :  { %696 = vmatmul.mubr.msk.f32.gmra.mxu1 %vm156_vm3, %v612_v36 }
  0xd5   :  { %698 = vmatprep.mubr.msk.f32.mxu1 %vm754_vm2, %v753_v0 }
  0xd8   :  { %699 = vmatmul.mubr.msk.f32.gmra.mxu1 %vm156_vm3, %v613_v37 }
  0xd9   :  { %722 = vmatprep.mubr.msk.f32.mxu1 %vm754_vm2, %v753_v0 }
 0x190   :  { %v232_v38 = vpop.f32.mrf.mxu1 }
 0x191   :  { %v233_v49 = vadd.f32 %v232_v38, %v144_v47 }
 0x192   :  { %v694_v39 = vpop.f32.mrf.mxu1 }
 0x193   :  { %v246_v52 = vmax.f32 %v233_v49, 0.0  ;;  %v507_v39 = vpop.permute.xlu1 %506 }
 0x194   :  { %v237_v41 = vpop.f32.mrf.mxu1 }
 0x195   :  { %v238_v45 = vadd.f32 %v237_v41, %v149_v43 }
 0x196   :  { %v697_v42 = vpop.f32.mrf.mxu1 }
 0x197   :  { %v247_v51 = vmax.f32 %v238_v45, 0.0 }
 0x198   :  { %v242_v44 = vpop.f32.mrf.mxu1 }
 0x199   :  { %v243_v46 = vadd.f32 %v242_v44, %v154_v40 }
 0x19a   :  { %v700_v48 = vpop.f32.mrf.mxu1 }
 0x19b   :  { %v248_v50 = vmax.f32 %v243_v46, 0.0 }
 0x19d   :  { %702 = vmatpush3.msra.mxu0 %v248_v50 }
 0x19e   :  { %703 = vmatprep.subr.mxu0 %v753_v0 }
 0x19f   :  { %704 = vmatpush3.msra.mxu0 %v247_v51 }
 0x1a0   :  { %705 = vmatprep.subr.mxu0 %v753_v0 }
 0x1a1   :  { %706 = vmatpush3.msra.mxu0 %v246_v52 }
 0x1a2   :  { %708 = vmatmul.mubr.msk.f32.vlgmr.msra.gmra.mxu0 %vm156_vm3, %v620_v53  ;;  %731 = vmatprep.subr.mxu0 %v753_v0 }
 0x1a3   :  { %710 = vmatprep.mubr.msk.f32.mxu0 %vm754_vm2, %v753_v0 }
 0x1a6   :  { %711 = vmatmul.mubr.msk.f32.gmra.mxu0 %vm156_vm3, %v621_v54 }
 0x1a7   :  { %713 = vmatprep.mubr.msk.f32.mxu0 %vm754_vm2, %v753_v0 }
 0x1aa   :  { %714 = vmatmul.mubr.msk.f32.gmra.mxu0 %vm156_vm3, %v622_v55 }
 0x1ab   :  { %737 = vmatprep.mubr.msk.f32.mxu0 %vm754_vm2, %v753_v0 }
 0x262   :  { %v347_v56 = vpop.f32.mrf.mxu0 }
 0x263   :  { %v348_v2 = vadd.f32 %v347_v56, %v260_v63 }
 0x264   :  { %v709_v58 = vpop.f32.mrf.mxu0 }
 0x265   :  { %v364_v7 = vmul.f32 0.01, %v348_v2  ;;  %vm361_vm6 = vcmp.gt.f32.partialorder %v348_v2, 0.0 }
 0x266   :  { %v352_v59 = vpop.f32.mrf.mxu0 }
 0x267   :  { %v353_v62 = vadd.f32 %v352_v59, %v265_v60  ;;  %v367_v11 = vsel %vm361_vm6, %v348_v2, %v364_v7 }
 0x268   :  { %v712_v61 = vpop.f32.mrf.mxu0 }
 0x269   :  { %v365_v5 = vmul.f32 0.01, %v353_v62  ;;  %vm362_vm5 = vcmp.gt.f32.partialorder %v353_v62, 0.0 }
 0x26a   :  { %v357_v1 = vpop.f32.mrf.mxu0 }
 0x26b   :  { %v358_v3 = vadd.f32 %v357_v1, %v270_v57  ;;  %v368_v9 = vsel %vm362_vm5, %v353_v62, %v365_v5 }
 0x26c   :  { %v715_v4 = vpop.f32.mrf.mxu0 }
 0x26d   :  { %vm363_vm4 = vcmp.gt.f32.partialorder %v358_v3, 0.0  ;;  %v366_v6 = vmul.f32 0.01, %v358_v3 }
 0x26f   :  { %v369_v8 = vsel %vm363_vm4, %v358_v3, %v366_v6 }
 0x270   :  { %717 = vmatpush3.msra.mxu1 %v369_v8 }
 0x271   :  { %718 = vmatprep.subr.mxu1 %v753_v0 }
 0x272   :  { %719 = vmatpush3.msra.mxu1 %v368_v9 }
 0x273   :  { %720 = vmatprep.subr.mxu1 %v753_v0 }
 0x274   :  { %721 = vmatpush3.msra.mxu1 %v367_v11 }
 0x275   :  { %723 = vmatmul.mubr.msk.f32.vlgmr.msra.gmra.mxu1 %vm156_vm3, %v629_v10 }
 0x276   :  { %725 = vmatprep.mubr.msk.f32.mxu1 %vm754_vm2, %v753_v0 }
 0x279   :  { %726 = vmatmul.mubr.msk.f32.gmra.mxu1 %vm156_vm3, %v630_v12 }
 0x27a   :  { %728 = vmatprep.mubr.msk.f32.mxu1 %vm754_vm2, %v753_v0 }
 0x27d   :  { %729 = vmatmul.mubr.msk.f32.gmra.mxu1 %vm156_vm3, %v631_v13 }
 0x335   :  { %v468_v14 = vpop.f32.mrf.mxu1 }
 0x336   :  { %v469_v23 = vadd.f32 %v468_v14, %v381_v21 }
 0x337   :  { %v724_v16 = vpop.f32.mrf.mxu1 }
 0x338   :  { %v485_v28 = vmul.f32 0.01, %v469_v23  ;;  %vm482_vm9 = vcmp.gt.f32.partialorder %v469_v23, 0.0 }
 0x339   :  { %v473_v17 = vpop.f32.mrf.mxu1 }
 0x33a   :  { %v474_v20 = vadd.f32 %v473_v17, %v386_v18  ;;  %v488_v32 = vsel %vm482_vm9, %v469_v23, %v485_v28 }
 0x33b   :  { %v727_v19 = vpop.f32.mrf.mxu1 }
 0x33c   :  { %v486_v26 = vmul.f32 0.01, %v474_v20  ;;  %vm483_vm8 = vcmp.gt.f32.partialorder %v474_v20, 0.0 }
 0x33d   :  { %v478_v22 = vpop.f32.mrf.mxu1 }
 0x33e   :  { %v479_v24 = vadd.f32 %v478_v22, %v391_v15  ;;  %v489_v30 = vsel %vm483_vm8, %v474_v20, %v486_v26 }
 0x33f   :  { %v730_v25 = vpop.f32.mrf.mxu1 }
 0x340   :  { %vm484_vm7 = vcmp.gt.f32.partialorder %v479_v24, 0.0  ;;  %v487_v27 = vmul.f32 0.01, %v479_v24 }
 0x342   :  { %v490_v29 = vsel %vm484_vm7, %v479_v24, %v487_v27 }
 0x343   :  { %732 = vmatpush3.msra.mxu0 %v490_v29 }
 0x344   :  { %733 = vmatprep.subr.mxu0 %v753_v0 }
 0x345   :  { %734 = vmatpush3.msra.mxu0 %v489_v30 }
 0x346   :  { %735 = vmatprep.subr.mxu0 %v753_v0 }
 0x347   :  { %736 = vmatpush3.msra.mxu0 %v488_v32 }
 0x348   :  { %738 = vmatmul.mubr.msk.f32.vlgmr.msra.gmra.mxu0 %vm156_vm3, %v638_v31 }
 0x349   :  { %740 = vmatprep.mubr.msk.f32.mxu0 %vm754_vm2, %v753_v0 }
 0x34c   :  { %741 = vmatmul.mubr.msk.f32.gmra.mxu0 %vm156_vm3, %v639_v33 }
 0x34d   :  { %743 = vmatprep.mubr.msk.f32.mxu0 %vm754_vm2, %v753_v0 }
 0x350   :  { %744 = vmatmul.mubr.msk.f32.gmra.mxu0 %vm156_vm3, %v640_v34 }
 0x408   :  { %v588_v36 = vpop.f32.mrf.mxu0 }
 0x409   :  { %v589_v37 = vadd.f32 %v588_v36, %v502_v35 }
 0x40a   :  { %v739_v38 = vpop.f32.mrf.mxu0 }
 0x40b   :  { %601 = vst [vmem:[%s934_s3] sm:$0xff] %v589_v37 }
 0x40c   :  { %v593_v40 = vpop.f32.mrf.mxu0 }
 0x40d   :  { %v594_v41 = vadd.f32 %v593_v40, %v507_v39 }
 0x40e   :  { %v742_v42 = vpop.f32.mrf.mxu0 }
 0x40f   :  { %602 = vst [vmem:[%s934_s3 + $0x8] sm:$0x3] %v594_v41 }
 0x410   :  { %v598_v0 = vpop.f32.mrf.mxu0 }
 0x412   :  { %v745_v43 = vpop.f32.mrf.mxu0 }

</bundles_post_ra>
